<compile_context>
chip_gen: v6e
topology: v6e:2x2x1
jax: 0.10.0
libtpu: 0.0.40
codegen_flags: <defaults>
</compile_context>

<pallas_src>
import jax
import jax.numpy as jnp
from jax.experimental import pallas as pl
from jax.experimental.pallas import tpu as pltpu

C_IN = 120    # input / output channels of the block
C_MID = 32    # squeeze channels
MAX_TILE_N = 8192  # rows per grid step cap


def se_block_kernel(x_ref, w1_ref, b1_ref, w2_ref, b2_ref, o_ref):
    # x_ref : (TILE_N, 120)  w1_ref: (120, 32)  b1_ref: (1, 32)
    # w2_ref: (32, 120)      b2_ref: (1, 120)   o_ref : (TILE_N, 120)
    x = x_ref[...]

    # conv2d16 (1x1) == matmul + bias, then ReLU (accumulate in f32 on the MXU).
    h = jnp.dot(x, w1_ref[...], preferred_element_type=jnp.float32)
    h = jnp.maximum(h + b1_ref[...].astype(jnp.float32), 0.0)

    # conv2d17 (1x1) == matmul + bias.
    h = h.astype(w2_ref.dtype)
    y = jnp.dot(h, w2_ref[...], preferred_element_type=jnp.float32)
    y = y + b2_ref[...].astype(jnp.float32)

    # Hardsigmoid: clip(x/6 + 1/2, 0, 1)  -- multiply by 1/6, not divide.
    y = jnp.clip(y * (1.0 / 6.0) + 0.5, 0.0, 1.0)
    o_ref[...] = y.astype(o_ref.dtype)


def _sublane(dtype):
    """Minimum second-to-last-dim multiple for this dtype's vreg packing."""
    itemsize = jnp.dtype(dtype).itemsize
    return max(8, 32 // itemsize)  # 8 (f32), 16 (bf16), 32 (int8/fp8)


def se_block(x_nchw, w1, b1, w2, b2):
    """x_nchw: (N, 120, 1, 1); w1: (32,120,1,1); b1: (32,); w2: (120,32,1,1); b2: (120,)."""
    N = x_nchw.shape[0]
    dtype = x_nchw.dtype
    x2d = x_nchw.reshape(N, C_IN)

    # Weights/biases in the activation dtype (accumulation is f32 in-kernel).
    w1_m = w1.reshape(C_MID, C_IN).T.astype(dtype)   # (120, 32)
    b1_m = b1.reshape(1, C_MID).astype(dtype)        # (1, 32)
    w2_m = w2.reshape(C_IN, C_MID).T.astype(dtype)   # (32, 120)
    b2_m = b2.reshape(1, C_IN).astype(dtype)         # (1, 120)

    # Batch tile: aim for >= 2 grid steps (feeds both v7x TensorCores via the
    # "parallel" axis), rounded to the dtype's sublane count, capped at
    # MAX_TILE_N. Tiny N uses the full-extent escape hatch (tile_n == N).
    sub = _sublane(dtype)
    if N <= sub:
        tile_n = N
    else:
        half = pl.cdiv(N, 2)
        tile_n = min(MAX_TILE_N, ((half + sub - 1) // sub) * sub)
    grid_n = pl.cdiv(N, tile_n)

    itemsize = jnp.dtype(dtype).itemsize
    flops = 2 * N * (C_IN * C_MID + C_MID * C_IN)
    bytes_accessed = itemsize * (2 * N * C_IN            # x in, gate out
                                 + C_IN * C_MID + C_MID  # w1, b1
                                 + C_MID * C_IN + C_IN)  # w2, b2

    out2d = pl.pallas_call(
        se_block_kernel,
        out_shape=jax.ShapeDtypeStruct((N, C_IN), dtype),
        grid=(grid_n,),
        in_specs=[
            pl.BlockSpec((tile_n, C_IN), lambda i: (i, 0)),   # x: streamed per tile
            pl.BlockSpec((C_IN, C_MID), lambda i: (0, 0)),    # w1: resident
            pl.BlockSpec((1, C_MID), lambda i: (0, 0)),       # b1: resident
            pl.BlockSpec((C_MID, C_IN), lambda i: (0, 0)),    # w2: resident
            pl.BlockSpec((1, C_IN), lambda i: (0, 0)),        # b2: resident
        ],
        out_specs=pl.BlockSpec((tile_n, C_IN), lambda i: (i, 0)),
        compiler_params=pltpu.CompilerParams(
            dimension_semantics=("parallel",),
            vmem_limit_bytes=32 << 20),
        cost_estimate=pl.CostEstimate(
            flops=flops, transcendentals=0, bytes_accessed=bytes_accessed),
    )(x2d, w1_m, b1_m, w2_m, b2_m)

    return out2d.reshape(N, C_IN, 1, 1)


def init_params(key):
    """Deterministic synthetic parameters with PyTorch Conv2d shapes."""
    k1, k2, k3, k4 = jax.random.split(key, 4)
    # Conv2d(120, 32, 1x1): weight (32, 120, 1, 1), bias (32,)
    bound1 = 1.0 / (C_IN ** 0.5)
    w1 = jax.random.uniform(k1, (C_MID, C_IN, 1, 1), jnp.float32, -bound1, bound1)
    b1 = jax.random.uniform(k2, (C_MID,), jnp.float32, -bound1, bound1)
    # Conv2d(32, 120, 1x1): weight (120, 32, 1, 1), bias (120,)
    bound2 = 1.0 / (C_MID ** 0.5)
    w2 = jax.random.uniform(k3, (C_IN, C_MID, 1, 1), jnp.float32, -bound2, bound2)
    b2 = jax.random.uniform(k4, (C_IN,), jnp.float32, -bound2, bound2)
    return w1, b1, w2, b2


if __name__ == "__main__":
    key = jax.random.PRNGKey(0)
    kx, kp = jax.random.split(key)

    N = 2  # module's example used N=1; the kernel tiles any N
    x = jax.random.normal(kx, (N, C_IN, 1, 1), jnp.float32)
    w1, b1, w2, b2 = init_params(kp)

    out = se_block(x, w1, b1, w2, b2)
    jax.block_until_ready(out)

    # Reference check in plain JAX (same math as the PyTorch module).
    x2d = x.reshape(N, C_IN)
    h_ref = jnp.maximum(x2d @ w1.reshape(C_MID, C_IN).T + b1, 0.0)
    y_ref = h_ref @ w2.reshape(C_IN, C_MID).T + b2
    y_ref = jnp.clip(y_ref / 6.0 + 0.5, 0.0, 1.0).reshape(N, C_IN, 1, 1)
    assert out.shape == (N, C_IN, 1, 1)
    assert jnp.allclose(out, y_ref, atol=1e-5, rtol=1e-5)

    print("KERNEL_OK")
</pallas_src>

<mosaic_0001>
module attributes {stable_mosaic.version = 11 : i64} {
  func.func @se_block_kernel(%arg0: i32, %arg1: memref<2x120xf32, #tpu.memory_space<vmem>>, %arg2: memref<120x32xf32, #tpu.memory_space<vmem>>, %arg3: memref<1x32xf32, #tpu.memory_space<vmem>>, %arg4: memref<32x120xf32, #tpu.memory_space<vmem>>, %arg5: memref<1x120xf32, #tpu.memory_space<vmem>>, %arg6: memref<2x120xf32, #tpu.memory_space<vmem>>) attributes {dimension_semantics = [#tpu.dimension_semantics<parallel>], iteration_bounds = array<i64: 1>, scalar_prefetch = 0 : i64, scratch_operands = 0 : i64, tpu.core_type = #tpu.core_type<tc>, window_params = [{transform_indices = @transform_0, window_bounds = array<i64: 2, 120>}, {pipeline_mode = #tpu.pipeline_mode<synchronous>, transform_indices = @transform_1, window_bounds = array<i64: 120, 32>}, {pipeline_mode = #tpu.pipeline_mode<synchronous>, transform_indices = @transform_2, window_bounds = array<i64: 1, 32>}, {pipeline_mode = #tpu.pipeline_mode<synchronous>, transform_indices = @transform_3, window_bounds = array<i64: 32, 120>}, {pipeline_mode = #tpu.pipeline_mode<synchronous>, transform_indices = @transform_4, window_bounds = array<i64: 1, 120>}, {transform_indices = @transform_5, window_bounds = array<i64: 2, 120>}]} {
    %c0 = arith.constant 0 : index
    %c0_0 = arith.constant 0 : index
    %0 = vector.load %arg1[%c0, %c0_0] : memref<2x120xf32, #tpu.memory_space<vmem>>, vector<2x120xf32>
    %c0_1 = arith.constant 0 : index
    %c0_2 = arith.constant 0 : index
    %1 = vector.load %arg2[%c0_1, %c0_2] : memref<120x32xf32, #tpu.memory_space<vmem>>, vector<120x32xf32>
    %cst = arith.constant dense<0.000000e+00> : vector<2x32xf32>
    %2 = tpu.matmul %0, %1, %cst {dimension_numbers = #tpu.dot_dimension_numbers<[1], [0], [0], [1], [0, 0, 1, 1], [], []>} : vector<2x120xf32>, vector<120x32xf32>, vector<2x32xf32> -> vector<2x32xf32>
    %c0_3 = arith.constant 0 : index
    %c0_4 = arith.constant 0 : index
    %3 = vector.load %arg3[%c0_3, %c0_4] : memref<1x32xf32, #tpu.memory_space<vmem>>, vector<1x32xf32>
    %4 = vector.broadcast %3 : vector<1x32xf32> to vector<2x32xf32>
    %5 = arith.addf %2, %4 : vector<2x32xf32>
    %cst_5 = arith.constant 0.000000e+00 : f32
    %6 = vector.broadcast %cst_5 : f32 to vector<2x32xf32>
    %7 = arith.maximumf %5, %6 : vector<2x32xf32>
    %c0_6 = arith.constant 0 : index
    %c0_7 = arith.constant 0 : index
    %8 = vector.load %arg4[%c0_6, %c0_7] : memref<32x120xf32, #tpu.memory_space<vmem>>, vector<32x120xf32>
    %cst_8 = arith.constant dense<0.000000e+00> : vector<2x120xf32>
    %9 = tpu.matmul %7, %8, %cst_8 {dimension_numbers = #tpu.dot_dimension_numbers<[1], [0], [0], [1], [0, 0, 1, 1], [], []>} : vector<2x32xf32>, vector<32x120xf32>, vector<2x120xf32> -> vector<2x120xf32>
    %c0_9 = arith.constant 0 : index
    %c0_10 = arith.constant 0 : index
    %10 = vector.load %arg5[%c0_9, %c0_10] : memref<1x120xf32, #tpu.memory_space<vmem>>, vector<1x120xf32>
    %11 = vector.broadcast %10 : vector<1x120xf32> to vector<2x120xf32>
    %12 = arith.addf %9, %11 : vector<2x120xf32>
    %cst_11 = arith.constant 0.166666672 : f32
    %13 = vector.broadcast %cst_11 : f32 to vector<2x120xf32>
    %14 = arith.mulf %12, %13 : vector<2x120xf32>
    %cst_12 = arith.constant 5.000000e-01 : f32
    %15 = vector.broadcast %cst_12 : f32 to vector<2x120xf32>
    %16 = arith.addf %14, %15 : vector<2x120xf32>
    %cst_13 = arith.constant 0.000000e+00 : f32
    %cst_14 = arith.constant 1.000000e+00 : f32
    %17 = vector.broadcast %cst_13 : f32 to vector<2x120xf32>
    %18 = arith.maximumf %17, %16 : vector<2x120xf32>
    %19 = vector.broadcast %cst_14 : f32 to vector<2x120xf32>
    %20 = arith.minimumf %19, %18 : vector<2x120xf32>
    %c0_15 = arith.constant 0 : index
    %c0_16 = arith.constant 0 : index
    %21 = vector.load %arg6[%c0_15, %c0_16] : memref<2x120xf32, #tpu.memory_space<vmem>>, vector<2x120xf32>
    tpu.vector_store %arg6[%c0_15, %c0_16], %20 {strides = array<i32>} : memref<2x120xf32, #tpu.memory_space<vmem>>, vector<2x120xf32>,
    return
  }
  func.func @transform_0(%arg0: i32) -> (i32, i32) {
    %c0_i32 = arith.constant 0 : i32
    %c0_i32_0 = arith.constant 0 : i32
    return %arg0, %c0_i32 : i32, i32
  }
  func.func @transform_1(%arg0: i32) -> (i32, i32) {
    %c0_i32 = arith.constant 0 : i32
    %c0_i32_0 = arith.constant 0 : i32
    %c0_i32_1 = arith.constant 0 : i32
    return %c0_i32, %c0_i32_0 : i32, i32
  }
  func.func @transform_2(%arg0: i32) -> (i32, i32) {
    %c0_i32 = arith.constant 0 : i32
    %c0_i32_0 = arith.constant 0 : i32
    %c0_i32_1 = arith.constant 0 : i32
    return %c0_i32, %c0_i32_0 : i32, i32
  }
  func.func @transform_3(%arg0: i32) -> (i32, i32) {
    %c0_i32 = arith.constant 0 : i32
    %c0_i32_0 = arith.constant 0 : i32
    %c0_i32_1 = arith.constant 0 : i32
    return %c0_i32, %c0_i32_0 : i32, i32
  }
  func.func @transform_4(%arg0: i32) -> (i32, i32) {
    %c0_i32 = arith.constant 0 : i32
    %c0_i32_0 = arith.constant 0 : i32
    %c0_i32_1 = arith.constant 0 : i32
    return %c0_i32, %c0_i32_0 : i32, i32
  }
  func.func @transform_5(%arg0: i32) -> (i32, i32) {
    %c0_i32 = arith.constant 0 : i32
    %c0_i32_0 = arith.constant 0 : i32
    return %arg0, %c0_i32 : i32, i32
  }
}

</mosaic_0001>

<bundles_post_ra>
// kernel: tpu_custom_call.1
= control target key start
LH: loop header
LB: loop body
LE: loop exit
PB: predicated region body
PF: predicated region fallthrough
CT: control target
= control target key end

     0   :  { %v318_v1 = vmov 0.0   ;;  %vm319_vm0 = vmmov 0   ;;  %s420_s0 = inlined_call_operand.vmem [shape: f32[2,120], index: 0, kind: input, shape index: {}]   ;;  %s421_s1 = inlined_call_operand.vmem [shape: f32[120,32], index: 1, kind: input, shape index: {}]   ;;  %s422_s2 = inlined_call_operand.vmem [shape: f32[1,32], index: 2, kind: input, shape index: {}]   ;;  %s423_s3 = inlined_call_operand.vmem [shape: f32[32,120], index: 3, kind: input, shape index: {}]   ;;  %s424_s4 = inlined_call_operand.vmem [shape: f32[1,120], index: 4, kind: input, shape index: {}]   ;;  %s425_s5 = inlined_call_operand.hbm [shape: f32[2,120], index: 5, kind: output, shape index: {}]  }
   0x1   :  { %v36_v0 = vld [vmem:[%s421_s1 + $0x70] sm:$0xff]  ;;  %249 = vmatprep.subr.mxu0 %v318_v1  ;;  %v35_v2 = vld [vmem:[%s421_s1 + $0x68] sm:$0xff]  ;;  %279 = vmatprep.mubr.msk.f32.mxu0 %vm319_vm0, %v318_v1  ;;  %v34_v3 = vld [vmem:[%s421_s1 + $0x60] sm:$0xff] }
   0x2   :  { %250 = vmatpush3.msra.mxu0 %v36_v0  ;;  %282 = vmatprep.subr.mxu1 %v318_v1  ;;  %v33_v4 = vld [vmem:[%s421_s1 + $0x58] sm:$0xff] }
   0x3   :  { %251 = vmatprep.subr.mxu0 %v318_v1  ;;  %290 = vmatprep.mubr.msk.f32.mxu1 %vm319_vm0, %v318_v1  ;;  %v122_v5 = vld [vmem:[%s423_s3 + $0x18] sm:$0xff] }
   0x4   :  { %252 = vmatpush3.msra.mxu0 %v35_v2  ;;  %283 = vmatpush3.msra.mxu1 %v122_v5 }
   0x5   :  { %253 = vmatprep.subr.mxu0 %v318_v1 }
   0x6   :  { %254 = vmatpush3.msra.mxu0 %v34_v3 }
   0x7   :  { %10 = vsyncpa [#allocation3], 0  ;;  %255 = vmatprep.subr.mxu0 %v318_v1  ;;  %v32_v6 = vld [vmem:[%s421_s1 + $0x50] sm:$0xff]  ;;  %284 = vmatprep.subr.mxu1 %v318_v1  ;;  %v31_v7 = vld [vmem:[%s421_s1 + $0x48] sm:$0xff]  ;;  %vm44_vm1 = vcmask 982016   ;;  %vm130_vm2 = vcmask 261120  }
   0x8   :  { %256 = vmatpush3.msra.mxu0 %v33_v4  ;;  %v30_v8 = vld [vmem:[%s421_s1 + $0x40] sm:$0xff]  ;;  %v29_v9 = vld [vmem:[%s421_s1 + $0x38] sm:$0xff]  ;;  %v28_v10 = vld [vmem:[%s421_s1 + $0x30] sm:$0xff]  ;;  %vm208_vm3 = vcmask 975872  }
   0x9   :  { %257 = vmatprep.subr.mxu0 %v318_v1  ;;  %v27_v11 = vld [vmem:[%s421_s1 + $0x28] sm:$0xff]  ;;  %v26_v12 = vld [vmem:[%s421_s1 + $0x20] sm:$0xff]  ;;  %v25_v13 = vld [vmem:[%s421_s1 + $0x18] sm:$0xff] }
   0xa   :  { %258 = vmatpush3.msra.mxu0 %v32_v6  ;;  %v24_v14 = vld [vmem:[%s421_s1 + $0x10] sm:$0xff]  ;;  %v23_v15 = vld [vmem:[%s421_s1 + $0x8] sm:$0xff]  ;;  %v22_v16 = vld [vmem:[%s421_s1] sm:$0xff] }
   0xb   :  { %259 = vmatprep.subr.mxu0 %v318_v1  ;;  %v21_v17 = vld [vmem:[%s420_s0] sm:$0x3]  ;;  %v121_v18 = vld [vmem:[%s423_s3 + $0x10] sm:$0xff]  ;;  %v120_v19 = vld [vmem:[%s423_s3 + $0x8] sm:$0xff] }
   0xc   :  { %260 = vmatpush3.msra.mxu0 %v31_v7  ;;  %285 = vmatpush3.msra.mxu1 %v121_v18  ;;  %v119_v20 = vld [vmem:[%s423_s3] sm:$0xff]  ;;  %s320_s3 = smov [#allocation2]  }
   0xd   :  { %261 = vmatprep.subr.mxu0 %v318_v1  ;;  %286 = vmatprep.subr.mxu1 %v318_v1  ;;  %v224_v21 = vld [vmem:[%s422_s2] ss:$0 sm:$0xff]  ;;  %s216_s10 = sshll.u32 %s320_s3, 4  ;;  %s217_s10 = int_to_ptr.vmem [resolvable:$true] %s216_s10 }
   0xe   :  { %262 = vmatpush3.msra.mxu0 %v30_v8  ;;  %287 = vmatpush3.msra.mxu1 %v120_v19  ;;  %v226_v26 = vld [vmem:[%s424_s4] ss:$0 sm:$0xff]  ;;  %s296_s2 = scalar_lea.vmem %s217_s10, 32  ;;  %p301_p1 = scmp.lt.s32.totalorder %s217_s10, %s217_s10 }
   0xf   :  { %263 = vmatprep.subr.mxu0 %v318_v1  ;;  %288 = vmatprep.subr.mxu1 %v318_v1  ;;  %p297_p0 = scmp.ne.s32.totalorder %s217_s10, %s296_s2  ;;  %p302_p2 = scmp.lt.s32.totalorder %s296_s2, %s296_s2 }
  0x10   :  { %264 = vmatpush3.msra.mxu0 %v29_v9  ;;  %289 = vmatpush3.msra.mxu1 %v119_v20 }
  0x11   :  { %265 = vmatprep.subr.mxu0 %v318_v1  ;;  %p303_p3 = por %p302_p2, %p301_p1 }
  0x12   :  { %266 = vmatpush3.msra.mxu0 %v28_v10 }
  0x13   :  { %267 = vmatprep.subr.mxu0 %v318_v1  ;;  %p304_p4 = pnand %p303_p3, %p297_p0 }
  0x14   :  { %268 = vmatpush3.msra.mxu0 %v27_v11 }
  0x15   :  { %269 = vmatprep.subr.mxu0 %v318_v1 }
  0x16   :  { %270 = vmatpush3.msra.mxu0 %v26_v12 }
  0x17   :  { %271 = vmatprep.subr.mxu0 %v318_v1 }
  0x18   :  { %272 = vmatpush3.msra.mxu0 %v25_v13 }
  0x19   :  { %273 = vmatprep.subr.mxu0 %v318_v1 }
  0x1a   :  { %274 = vmatpush3.msra.mxu0 %v24_v14 }
  0x1b   :  { %275 = vmatprep.subr.mxu0 %v318_v1 }
  0x1c   :  { %276 = vmatpush3.msra.mxu0 %v23_v15 }
  0x1d   :  { %277 = vmatprep.subr.mxu0 %v318_v1 }
  0x1e   :  { %278 = vmatpush3.msra.mxu0 %v22_v16 }
  0x1f   :  { %280 = vmatmul.mubr.msk.f32.vlgmr.msra.gmra.mxu0 %vm44_vm1, %v21_v17 }
  0xdf   :  { %v114_v22 = vpop.f32.mrf.mxu0 }
  0xe0   :  { %v115_v23 = vadd.f32 %v224_v21, %v114_v22 }
  0xe1   :  { %v281_v24 = vpop.f32.mrf.mxu0 }
  0xe2   :  { %v118_v25 = vmax.f32 %v115_v23, 0.0 }
  0xe4   :  { %291 = vmatmul.mubr.msk.f32.vlgmr.msra.gmra.mxu1 %vm130_vm2, %v118_v25 }
 0x1a4   :  { %v200_v27 = vpop.f32.mrf.mxu1 }
 0x1a5   :  { %v201_v28 = vadd.f32 %v226_v26, %v200_v27 }
 0x1a6   :  { %v292_v29 = vpop.f32.mrf.mxu1 }
 0x1a7   :  { %v204_v30 = vmul.f32 0.16666667, %v201_v28 }
 0x1a9   :  { %v205_v31 = vadd.f32 0.5, %v204_v30 }
 0x1ab   :  { %v206_v32 = vmax.f32 %v205_v31, 0.0 }
 0x1ad   :  { %v207_v33 = vmin.f32 %v206_v32, 1.0 }
 0x1af   :  { %209 = vst.msk [vmem:[#allocation2] sm:$0x3] %vm208_vm3, %v207_v33 }
 0x1b0   :  { %307 = shalt.err (!%p304_p4)
}
 0x1b1   :  { %219 = dma.vmem_to_hbm [thread:$0]  %s217_s10, 32, %s425_s5, [#allocation3]  }
 0x1b2   :  { %316 = dma.done.wait [#allocation3], 32  }
 0x1b3   :  { %317 = vsyncadd [#allocation3], 4294967264 }
 0x1b4   :  { %223 = vsyncpa [#allocation3], 1 }

</bundles_post_ra>
